<compile_context>
chip_gen: v6e
topology: v6e:2x2x1
jax: 0.10.0
libtpu: 0.0.40
codegen_flags: <defaults>
</compile_context>

<pallas_src>
import functools

import jax
import jax.numpy as jnp
import numpy as np
from jax import lax
from jax.experimental import pallas as pl
from jax.experimental.pallas import tpu as pltpu


def _cru_kernel(x_ref, wsq1_ref, wsq2_ref, wgwc_ref, bgwc_ref, wpwc2_ref,
                o_ref, wide_ref, *, H, W):
    # x_ref block: (1, C, H*W)  -- one batch element, channels on sublanes,
    # flattened spatial on lanes.
    f32 = jnp.float32
    HW = H * W
    x = x_ref[0]                                   # (C, HW)
    C = x.shape[0]
    up_sq, up_ch = wsq1_ref.shape
    low_sq, _ = wsq2_ref.shape
    c_top = wpwc2_ref.shape[0]                     # C - low_sq

    # ---- squeeze1 / squeeze2 (1x1 convs, no bias): (Cout, Cin) @ (Cin, HW).
    up_s = jnp.dot(wsq1_ref[...], x[:up_ch, :],
                   preferred_element_type=f32)      # (up_sq, HW)
    low_s = jnp.dot(wsq2_ref[...], x[up_ch:, :],
                    preferred_element_type=f32)     # (low_sq, HW)

    # ---- Build the im2col operand for the 3x3 conv (padding=1) once.
    # `wide` is up_s flattened along HW with W+1 zeros on each side; a tap
    # shift of (dy, dx) is then a contiguous lane-window at offset
    # (W+1) + dy*W + dx.  Row (dy) overflow lands in the zero pads; the
    # column wrap for dx != 0 is masked out.
    wide_ref[...] = jnp.zeros(wide_ref.shape, f32)
    wide_ref[:, W + 1:W + 1 + HW] = up_s

    col = lax.broadcasted_iota(jnp.int32, (up_sq, HW), 1) % W
    not_first_col = col >= 1                        # valid when dx == -1
    not_last_col = col < (W - 1)                    # valid when dx == +1

    taps = []
    for ky in range(3):
        for kx in range(3):
            dy, dx = ky - 1, kx - 1
            off = (W + 1) + dy * W + dx
            t = wide_ref[:, off:off + HW]           # (up_sq, HW)
            if dx == -1:
                t = jnp.where(not_first_col, t, 0.0)
            elif dx == 1:
                t = jnp.where(not_last_col, t, 0.0)
            taps.append(t)
    im2col = jnp.concatenate(taps, axis=0)          # (9*up_sq, HW)

    # ---- GWC (3x3 grouped conv, bias) + PWC1 fused into one matmul.
    # (PWC1 was folded into the centre tap of the dense weight in the wrapper.)
    y1 = jnp.dot(wgwc_ref[...], im2col,
                 preferred_element_type=f32) + bgwc_ref[...]   # (C, HW)

    # ---- PWC2 (1x1 conv, no bias).
    pwc2 = jnp.dot(wpwc2_ref[...], low_s,
                   preferred_element_type=f32)      # (C - low_sq, HW)

    # ---- AdaptiveAvgPool2d(1) + softmax gate computed from the 2C channel
    # means (never materializing concat([Y1, Y2]) over (2C, HW)).
    m = jnp.concatenate([jnp.mean(y1, axis=1, keepdims=True),
                         jnp.mean(pwc2, axis=1, keepdims=True),
                         jnp.mean(low_s, axis=1, keepdims=True)],
                        axis=0)                     # (2C, 1)
    m = m - jnp.max(m, axis=0, keepdims=True)
    e = jnp.exp(m)
    sm = e / jnp.sum(e, axis=0, keepdims=True)

    g1 = sm[:C]                                     # gate for Y1
    g2_top = sm[C:C + c_top]                        # gate for PWC2 rows of Y2
    g2_bot = sm[C + c_top:]                         # gate for low_s rows of Y2

    y2_gated = jnp.concatenate([g2_top * pwc2, g2_bot * low_s], axis=0)  # (C, HW)
    o_ref[0] = (g1 * y1 + y2_gated).astype(o_ref.dtype)


def cru_pallas(x_nchw, params, group_size=2):
    N, C, H, W = x_nchw.shape
    HW = H * W
    w_sq1, w_sq2 = params["w_sq1"], params["w_sq2"]
    w_gwc, b_gwc = params["w_gwc"], params["b_gwc"]
    w_pwc1, w_pwc2 = params["w_pwc1"], params["w_pwc2"]

    up_sq = w_sq1.shape[0]

    # 1x1 conv weights (Cout, Cin, 1, 1) -> (Cout, Cin); already the right
    # orientation for (Cout, Cin) @ (Cin, HW).
    w_sq1_m = w_sq1[:, :, 0, 0]
    w_sq2_m = w_sq2[:, :, 0, 0]
    w_pwc2_m = w_pwc2[:, :, 0, 0]

    # Expand the grouped GWC weight (C, up_sq/g, 3, 3) into a block-diagonal
    # dense per-tap weight (3, 3, up_sq, C), fold PWC1 into the centre tap,
    # then flatten taps -> a single (C, 9*up_sq) matrix matching the im2col
    # row ordering ((ky*3 + kx)*up_sq + ci).
    cin_g = up_sq // group_size
    cout_g = C // group_size
    w_dense = jnp.zeros((3, 3, up_sq, C), dtype=jnp.float32)
    for g in range(group_size):
        blk = w_gwc[g * cout_g:(g + 1) * cout_g]      # (cout_g, cin_g, 3, 3)
        blk = jnp.transpose(blk, (2, 3, 1, 0))        # (3, 3, cin_g, cout_g)
        w_dense = w_dense.at[:, :, g * cin_g:(g + 1) * cin_g,
                             g * cout_g:(g + 1) * cout_g].set(blk)
    w_dense = w_dense.at[1, 1].add(jnp.transpose(w_pwc1[:, :, 0, 0]))
    w_gwc_mat = jnp.transpose(w_dense, (3, 0, 1, 2)).reshape(C, 9 * up_sq)

    b_gwc_2d = b_gwc.reshape(C, 1)

    # NCHW -> (N, C, H*W): a free, contiguous reshape (no transpose, no pad).
    x_flat = x_nchw.reshape(N, C, HW).astype(jnp.float32)

    kernel = functools.partial(_cru_kernel, H=H, W=W)

    def full_spec(arr):
        nd = len(arr.shape)
        return pl.BlockSpec(arr.shape, lambda n, _nd=nd: (0,) * _nd)

    in_bytes = 4 * C * HW
    out_bytes = 4 * C * HW
    w_bytes = 4 * int(w_sq1_m.size + w_sq2_m.size + w_gwc_mat.size
                      + b_gwc_2d.size + w_pwc2_m.size)
    vmem_limit = int(min(64 * 2**20,
                         max(16 * 2**20, 4 * (in_bytes + out_bytes) + w_bytes)))

    out_flat = pl.pallas_call(
        kernel,
        out_shape=jax.ShapeDtypeStruct((N, C, HW), jnp.float32),
        grid=(N,),
        in_specs=[
            pl.BlockSpec((1, C, HW), lambda n: (n, 0, 0)),
            full_spec(w_sq1_m),
            full_spec(w_sq2_m),
            full_spec(w_gwc_mat),
            full_spec(b_gwc_2d),
            full_spec(w_pwc2_m),
        ],
        out_specs=pl.BlockSpec((1, C, HW), lambda n: (n, 0, 0)),
        scratch_shapes=[pltpu.VMEM((up_sq, HW + 2 * (W + 1)), jnp.float32)],
        compiler_params=pltpu.CompilerParams(
            dimension_semantics=("parallel",),
            vmem_limit_bytes=vmem_limit),
    )(x_flat, w_sq1_m, w_sq2_m, w_gwc_mat, b_gwc_2d, w_pwc2_m)

    # (N, C, H*W) -> NCHW: free reshape, no extra HBM pass.
    return out_flat.reshape(N, C, H, W)


def init_params(key, op_channel, alpha=0.5, squeeze_radio=2, group_size=2,
                group_kernel_size=3):
    """Deterministic synthetic parameters with the same shapes as CRU.__init__."""
    up = int(alpha * op_channel)
    low = op_channel - up
    up_sq = up // squeeze_radio
    low_sq = low // squeeze_radio
    ks = jax.random.split(key, 6)

    def w(k, shape, fan_in):
        return jax.random.normal(k, shape, jnp.float32) / np.sqrt(float(fan_in))

    gks = group_kernel_size
    return {
        "w_sq1": w(ks[0], (up_sq, up, 1, 1), up),
        "w_sq2": w(ks[1], (low_sq, low, 1, 1), low),
        "w_gwc": w(ks[2], (op_channel, up_sq // group_size, gks, gks),
                   (up_sq // group_size) * gks * gks),
        "b_gwc": 0.1 * jax.random.normal(ks[3], (op_channel,), jnp.float32),
        "w_pwc1": w(ks[4], (op_channel, up_sq, 1, 1), up_sq),
        "w_pwc2": w(ks[5], (op_channel - low_sq, low_sq, 1, 1), low_sq),
    }


def cru_reference(x, params, group_size=2):
    """Pure-JAX reference mirroring the PyTorch forward (NCHW)."""
    dn = ("NCHW", "OIHW", "NCHW")
    conv = functools.partial(lax.conv_general_dilated, window_strides=(1, 1),
                             dimension_numbers=dn,
                             precision=lax.Precision.HIGHEST)
    up_ch = params["w_sq1"].shape[1]
    up, low = x[:, :up_ch], x[:, up_ch:]
    up_s = conv(up, params["w_sq1"], padding="VALID")
    low_s = conv(low, params["w_sq2"], padding="VALID")
    gwc = conv(up_s, params["w_gwc"], padding=((1, 1), (1, 1)),
               feature_group_count=group_size)
    gwc = gwc + params["b_gwc"][None, :, None, None]
    Y1 = gwc + conv(up_s, params["w_pwc1"], padding="VALID")
    Y2 = jnp.concatenate(
        [conv(low_s, params["w_pwc2"], padding="VALID"), low_s], axis=1)
    out = jnp.concatenate([Y1, Y2], axis=1)
    avg = jnp.mean(out, axis=(2, 3), keepdims=True)
    out = jax.nn.softmax(avg, axis=1) * out
    c2 = out.shape[1] // 2
    return out[:, :c2] + out[:, c2:]


if __name__ == "__main__":
    key = jax.random.PRNGKey(0)
    kx, kp = jax.random.split(key)

    # op_channel=8 so that up_channel//squeeze_radio (=2) is divisible by the
    # group count (=2), matching the PyTorch module's constructor constraints.
    N, C, H, W = 2, 8, 16, 16
    x = jax.random.normal(kx, (N, C, H, W), jnp.float32)
    params = init_params(kp, C)

    out = cru_pallas(x, params)
    out = jax.block_until_ready(out)

    ref = cru_reference(x, params)
    np.testing.assert_allclose(np.asarray(out), np.asarray(ref),
                               rtol=2e-3, atol=2e-3)
    print("KERNEL_OK")
</pallas_src>

<mosaic_0001>
module attributes {stable_mosaic.version = 11 : i64} {
  func.func @_cru_kernel(%arg0: i32, %arg1: memref<1x8x256xf32, #tpu.memory_space<vmem>>, %arg2: memref<2x4xf32, #tpu.memory_space<vmem>>, %arg3: memref<2x4xf32, #tpu.memory_space<vmem>>, %arg4: memref<8x18xf32, #tpu.memory_space<vmem>>, %arg5: memref<8x1xf32, #tpu.memory_space<vmem>>, %arg6: memref<6x2xf32, #tpu.memory_space<vmem>>, %arg7: memref<1x8x256xf32, #tpu.memory_space<vmem>>, %arg8: memref<2x290xf32, #tpu.memory_space<vmem>>) attributes {dimension_semantics = [#tpu.dimension_semantics<parallel>], iteration_bounds = array<i64: 2>, scalar_prefetch = 0 : i64, scratch_operands = 1 : i64, tpu.core_type = #tpu.core_type<tc>, window_params = [{transform_indices = @transform_0, window_bounds = array<i64: 1, 8, 256>}, {pipeline_mode = #tpu.pipeline_mode<synchronous>, transform_indices = @transform_1, window_bounds = array<i64: 2, 4>}, {pipeline_mode = #tpu.pipeline_mode<synchronous>, transform_indices = @transform_2, window_bounds = array<i64: 2, 4>}, {pipeline_mode = #tpu.pipeline_mode<synchronous>, transform_indices = @transform_3, window_bounds = array<i64: 8, 18>}, {pipeline_mode = #tpu.pipeline_mode<synchronous>, transform_indices = @transform_4, window_bounds = array<i64: 8, 1>}, {pipeline_mode = #tpu.pipeline_mode<synchronous>, transform_indices = @transform_5, window_bounds = array<i64: 6, 2>}, {transform_indices = @transform_6, window_bounds = array<i64: 1, 8, 256>}]} {
    %c0 = arith.constant 0 : index
    %c0_0 = arith.constant 0 : index
    %c0_1 = arith.constant 0 : index
    %0 = vector.load %arg1[%c0, %c0_0, %c0_1] : memref<1x8x256xf32, #tpu.memory_space<vmem>>, vector<1x8x256xf32>
    %1 = vector.shape_cast %0 : vector<1x8x256xf32> to vector<8x256xf32>
    %c0_2 = arith.constant 0 : index
    %c0_3 = arith.constant 0 : index
    %2 = vector.load %arg2[%c0_2, %c0_3] : memref<2x4xf32, #tpu.memory_space<vmem>>, vector<2x4xf32>
    %3 = vector.extract_strided_slice %1 {offsets = [0, 0], sizes = [4, 256], strides = [1, 1]} : vector<8x256xf32> to vector<4x256xf32>
    %cst = arith.constant dense<0.000000e+00> : vector<2x256xf32>
    %4 = tpu.matmul %2, %3, %cst {dimension_numbers = #tpu.dot_dimension_numbers<[1], [0], [0], [1], [0, 0, 1, 1], [], []>} : vector<2x4xf32>, vector<4x256xf32>, vector<2x256xf32> -> vector<2x256xf32>
    %c0_4 = arith.constant 0 : index
    %c0_5 = arith.constant 0 : index
    %5 = vector.load %arg3[%c0_4, %c0_5] : memref<2x4xf32, #tpu.memory_space<vmem>>, vector<2x4xf32>
    %6 = vector.extract_strided_slice %1 {offsets = [4, 0], sizes = [4, 256], strides = [1, 1]} : vector<8x256xf32> to vector<4x256xf32>
    %cst_6 = arith.constant dense<0.000000e+00> : vector<2x256xf32>
    %7 = tpu.matmul %5, %6, %cst_6 {dimension_numbers = #tpu.dot_dimension_numbers<[1], [0], [0], [1], [0, 0, 1, 1], [], []>} : vector<2x4xf32>, vector<4x256xf32>, vector<2x256xf32> -> vector<2x256xf32>
    %cst_7 = arith.constant 0.000000e+00 : f32
    %8 = vector.broadcast %cst_7 : f32 to vector<2x290xf32>
    %c0_8 = arith.constant 0 : index
    %c0_9 = arith.constant 0 : index
    %9 = vector.load %arg8[%c0_8, %c0_9] : memref<2x290xf32, #tpu.memory_space<vmem>>, vector<2x290xf32>
    tpu.vector_store %arg8[%c0_8, %c0_9], %8 {strides = array<i32>} : memref<2x290xf32, #tpu.memory_space<vmem>>, vector<2x290xf32>,
    %c0_10 = arith.constant 0 : index
    %c17 = arith.constant 17 : index
    %10 = vector.load %arg8[%c0_10, %c17] : memref<2x290xf32, #tpu.memory_space<vmem>>, vector<2x256xf32>
    tpu.vector_store %arg8[%c0_10, %c17], %4 {strides = array<i32>} : memref<2x290xf32, #tpu.memory_space<vmem>>, vector<2x256xf32>,
    %11 = tpu.iota {dimensions = array<i32: 1>} : vector<2x256xi32>
    %c16_i32 = arith.constant 16 : i32
    %c0_i32 = arith.constant 0 : i32
    %12 = arith.cmpi eq, %c16_i32, %c0_i32 : i32
    %c1_i32 = arith.constant 1 : i32
    %13 = arith.select %12, %c1_i32, %c16_i32 : i32
    %14 = vector.broadcast %13 : i32 to vector<2x256xi32>
    %15 = arith.remsi %11, %14 : vector<2x256xi32>
    %c0_i32_11 = arith.constant 0 : i32
    %16 = vector.broadcast %c0_i32_11 : i32 to vector<2x256xi32>
    %17 = arith.cmpi ne, %15, %16 : vector<2x256xi32>
    %c0_i32_12 = arith.constant 0 : i32
    %18 = vector.broadcast %c0_i32_12 : i32 to vector<2x256xi32>
    %19 = arith.cmpi slt, %15, %18 : vector<2x256xi32>
    %c0_i32_13 = arith.constant 0 : i32
    %20 = arith.cmpi slt, %13, %c0_i32_13 : i32
    %21 = vector.broadcast %20 : i1 to vector<2x256xi1>
    %22 = vector.broadcast %21 : vector<2x256xi1> to vector<2x256xi1>
    %23 = arith.xori %19, %22 : vector<2x256xi1>
    %24 = arith.andi %23, %17 : vector<2x256xi1>
    %25 = vector.broadcast %13 : i32 to vector<2x256xi32>
    %26 = arith.addi %15, %25 : vector<2x256xi32>
    %27 = arith.select %24, %26, %15 : vector<2x256xi1>, vector<2x256xi32>
    %c1_i32_14 = arith.constant 1 : i32
    %28 = vector.broadcast %c1_i32_14 : i32 to vector<2x256xi32>
    %29 = arith.cmpi sge, %27, %28 : vector<2x256xi32>
    %c15_i32 = arith.constant 15 : i32
    %30 = vector.broadcast %c15_i32 : i32 to vector<2x256xi32>
    %31 = arith.cmpi slt, %27, %30 : vector<2x256xi32>
    %c0_15 = arith.constant 0 : index
    %c0_16 = arith.constant 0 : index
    %32 = vector.load %arg8[%c0_15, %c0_16] : memref<2x290xf32, #tpu.memory_space<vmem>>, vector<2x256xf32>
    %cst_17 = arith.constant 0.000000e+00 : f32
    %33 = vector.broadcast %cst_17 : f32 to vector<2x256xf32>
    %34 = arith.select %29, %32, %33 : vector<2x256xi1>, vector<2x256xf32>
    %c0_18 = arith.constant 0 : index
    %c1 = arith.constant 1 : index
    %35 = vector.load %arg8[%c0_18, %c1] : memref<2x290xf32, #tpu.memory_space<vmem>>, vector<2x256xf32>
    %c0_19 = arith.constant 0 : index
    %c2 = arith.constant 2 : index
    %36 = vector.load %arg8[%c0_19, %c2] : memref<2x290xf32, #tpu.memory_space<vmem>>, vector<2x256xf32>
    %cst_20 = arith.constant 0.000000e+00 : f32
    %37 = vector.broadcast %cst_20 : f32 to vector<2x256xf32>
    %38 = arith.select %31, %36, %37 : vector<2x256xi1>, vector<2x256xf32>
    %c0_21 = arith.constant 0 : index
    %c16 = arith.constant 16 : index
    %39 = vector.load %arg8[%c0_21, %c16] : memref<2x290xf32, #tpu.memory_space<vmem>>, vector<2x256xf32>
    %cst_22 = arith.constant 0.000000e+00 : f32
    %40 = vector.broadcast %cst_22 : f32 to vector<2x256xf32>
    %41 = arith.select %29, %39, %40 : vector<2x256xi1>, vector<2x256xf32>
    %c0_23 = arith.constant 0 : index
    %c17_24 = arith.constant 17 : index
    %42 = vector.load %arg8[%c0_23, %c17_24] : memref<2x290xf32, #tpu.memory_space<vmem>>, vector<2x256xf32>
    %c0_25 = arith.constant 0 : index
    %c18 = arith.constant 18 : index
    %43 = vector.load %arg8[%c0_25, %c18] : memref<2x290xf32, #tpu.memory_space<vmem>>, vector<2x256xf32>
    %cst_26 = arith.constant 0.000000e+00 : f32
    %44 = vector.broadcast %cst_26 : f32 to vector<2x256xf32>
    %45 = arith.select %31, %43, %44 : vector<2x256xi1>, vector<2x256xf32>
    %c0_27 = arith.constant 0 : index
    %c32 = arith.constant 32 : index
    %46 = vector.load %arg8[%c0_27, %c32] : memref<2x290xf32, #tpu.memory_space<vmem>>, vector<2x256xf32>
    %cst_28 = arith.constant 0.000000e+00 : f32
    %47 = vector.broadcast %cst_28 : f32 to vector<2x256xf32>
    %48 = arith.select %29, %46, %47 : vector<2x256xi1>, vector<2x256xf32>
    %c0_29 = arith.constant 0 : index
    %c33 = arith.constant 33 : index
    %49 = vector.load %arg8[%c0_29, %c33] : memref<2x290xf32, #tpu.memory_space<vmem>>, vector<2x256xf32>
    %c0_30 = arith.constant 0 : index
    %c34 = arith.constant 34 : index
    %50 = vector.load %arg8[%c0_30, %c34] : memref<2x290xf32, #tpu.memory_space<vmem>>, vector<2x256xf32>
    %cst_31 = arith.constant 0.000000e+00 : f32
    %51 = vector.broadcast %cst_31 : f32 to vector<2x256xf32>
    %52 = arith.select %31, %50, %51 : vector<2x256xi1>, vector<2x256xf32>
    %53 = tpu.concatenate %34, %35, %38, %41, %42, %45, %48, %49, %52 in 0 : vector<2x256xf32>, vector<2x256xf32>, vector<2x256xf32>, vector<2x256xf32>, vector<2x256xf32>, vector<2x256xf32>, vector<2x256xf32>, vector<2x256xf32>, vector<2x256xf32> -> vector<18x256xf32>
    %c0_32 = arith.constant 0 : index
    %c0_33 = arith.constant 0 : index
    %54 = vector.load %arg4[%c0_32, %c0_33] : memref<8x18xf32, #tpu.memory_space<vmem>>, vector<8x18xf32>
    %cst_34 = arith.constant dense<0.000000e+00> : vector<8x256xf32>
    %55 = tpu.matmul %54, %53, %cst_34 {dimension_numbers = #tpu.dot_dimension_numbers<[1], [0], [0], [1], [0, 0, 1, 1], [], []>} : vector<8x18xf32>, vector<18x256xf32>, vector<8x256xf32> -> vector<8x256xf32>
    %c0_35 = arith.constant 0 : index
    %c0_36 = arith.constant 0 : index
    %56 = vector.load %arg5[%c0_35, %c0_36] : memref<8x1xf32, #tpu.memory_space<vmem>>, vector<8x1xf32>
    %57 = vector.broadcast %56 : vector<8x1xf32> to vector<8x256xf32>
    %58 = arith.addf %55, %57 : vector<8x256xf32>
    %c0_37 = arith.constant 0 : index
    %c0_38 = arith.constant 0 : index
    %59 = vector.load %arg6[%c0_37, %c0_38] : memref<6x2xf32, #tpu.memory_space<vmem>>, vector<6x2xf32>
    %cst_39 = arith.constant dense<0.000000e+00> : vector<6x256xf32>
    %60 = tpu.matmul %59, %7, %cst_39 {dimension_numbers = #tpu.dot_dimension_numbers<[1], [0], [0], [1], [0, 0, 1, 1], [], []>} : vector<6x2xf32>, vector<2x256xf32>, vector<6x256xf32> -> vector<6x256xf32>
    %cst_40 = arith.constant dense<0.000000e+00> : vector<8xf32>
    %61 = vector.multi_reduction <add>, %58, %cst_40 [1] : vector<8x256xf32> to vector<8xf32>
    %62 = vector.shape_cast %61 : vector<8xf32> to vector<8x1xf32>
    %cst_41 = arith.constant 2.560000e+02 : f32
    %63 = vector.broadcast %cst_41 : f32 to vector<8x1xf32>
    %64 = arith.divf %62, %63 : vector<8x1xf32>
    %cst_42 = arith.constant dense<0.000000e+00> : vector<6xf32>
    %65 = vector.multi_reduction <add>, %60, %cst_42 [1] : vector<6x256xf32> to vector<6xf32>
    %66 = vector.shape_cast %65 : vector<6xf32> to vector<6x1xf32>
    %cst_43 = arith.constant 2.560000e+02 : f32
    %67 = vector.broadcast %cst_43 : f32 to vector<6x1xf32>
    %68 = arith.divf %66, %67 : vector<6x1xf32>
    %cst_44 = arith.constant dense<0.000000e+00> : vector<2xf32>
    %69 = vector.multi_reduction <add>, %7, %cst_44 [1] : vector<2x256xf32> to vector<2xf32>
    %70 = vector.shape_cast %69 : vector<2xf32> to vector<2x1xf32>
    %cst_45 = arith.constant 2.560000e+02 : f32
    %71 = vector.broadcast %cst_45 : f32 to vector<2x1xf32>
    %72 = arith.divf %70, %71 : vector<2x1xf32>
    %73 = tpu.concatenate %64, %68, %72 in 0 : vector<8x1xf32>, vector<6x1xf32>, vector<2x1xf32> -> vector<16x1xf32>
    %cst_46 = arith.constant dense<0xFF800000> : vector<1xf32>
    %74 = vector.multi_reduction <maximumf>, %73, %cst_46 [0] : vector<16x1xf32> to vector<1xf32>
    %75 = vector.shape_cast %74 : vector<1xf32> to vector<1x1xf32>
    %76 = vector.broadcast %75 : vector<1x1xf32> to vector<16x1xf32>
    %77 = arith.subf %73, %76 : vector<16x1xf32>
    %78 = math.exp %77 : vector<16x1xf32>
    %cst_47 = arith.constant dense<0.000000e+00> : vector<1xf32>
    %79 = vector.multi_reduction <add>, %78, %cst_47 [0] : vector<16x1xf32> to vector<1xf32>
    %80 = vector.shape_cast %79 : vector<1xf32> to vector<1x1xf32>
    %81 = vector.broadcast %80 : vector<1x1xf32> to vector<16x1xf32>
    %82 = arith.divf %78, %81 : vector<16x1xf32>
    %83 = vector.extract_strided_slice %82 {offsets = [0, 0], sizes = [8, 1], strides = [1, 1]} : vector<16x1xf32> to vector<8x1xf32>
    %84 = vector.extract_strided_slice %82 {offsets = [8, 0], sizes = [6, 1], strides = [1, 1]} : vector<16x1xf32> to vector<6x1xf32>
    %85 = vector.extract_strided_slice %82 {offsets = [14, 0], sizes = [2, 1], strides = [1, 1]} : vector<16x1xf32> to vector<2x1xf32>
    %86 = vector.broadcast %84 : vector<6x1xf32> to vector<6x256xf32>
    %87 = arith.mulf %86, %60 : vector<6x256xf32>
    %88 = vector.broadcast %85 : vector<2x1xf32> to vector<2x256xf32>
    %89 = arith.mulf %88, %7 : vector<2x256xf32>
    %90 = tpu.concatenate %87, %89 in 0 : vector<6x256xf32>, vector<2x256xf32> -> vector<8x256xf32>
    %91 = vector.broadcast %83 : vector<8x1xf32> to vector<8x256xf32>
    %92 = arith.mulf %91, %58 : vector<8x256xf32>
    %93 = arith.addf %92, %90 : vector<8x256xf32>
    %c0_48 = arith.constant 0 : index
    %c0_49 = arith.constant 0 : index
    %c0_50 = arith.constant 0 : index
    %94 = vector.load %arg7[%c0_48, %c0_49, %c0_50] : memref<1x8x256xf32, #tpu.memory_space<vmem>>, vector<1x8x256xf32>
    %95 = vector.shape_cast %94 : vector<1x8x256xf32> to vector<8x256xf32>
    %96 = vector.shape_cast %93 : vector<8x256xf32> to vector<1x8x256xf32>
    tpu.vector_store %arg7[%c0_48, %c0_49, %c0_50], %96 {strides = array<i32>} : memref<1x8x256xf32, #tpu.memory_space<vmem>>, vector<1x8x256xf32>,
    return
  }
  func.func @transform_0(%arg0: i32) -> (i32, i32, i32) {
    %c0_i32 = arith.constant 0 : i32
    %c0_i32_0 = arith.constant 0 : i32
    %c0_i32_1 = arith.constant 0 : i32
    return %arg0, %c0_i32, %c0_i32_0 : i32, i32, i32
  }
  func.func @transform_1(%arg0: i32) -> (i32, i32) {
    %c0_i32 = arith.constant 0 : i32
    %c0_i32_0 = arith.constant 0 : i32
    %c0_i32_1 = arith.constant 0 : i32
    return %c0_i32, %c0_i32_0 : i32, i32
  }
  func.func @transform_2(%arg0: i32) -> (i32, i32) {
    %c0_i32 = arith.constant 0 : i32
    %c0_i32_0 = arith.constant 0 : i32
    %c0_i32_1 = arith.constant 0 : i32
    return %c0_i32, %c0_i32_0 : i32, i32
  }
  func.func @transform_3(%arg0: i32) -> (i32, i32) {
    %c0_i32 = arith.constant 0 : i32
    %c0_i32_0 = arith.constant 0 : i32
    %c0_i32_1 = arith.constant 0 : i32
    return %c0_i32, %c0_i32_0 : i32, i32
  }
  func.func @transform_4(%arg0: i32) -> (i32, i32) {
    %c0_i32 = arith.constant 0 : i32
    %c0_i32_0 = arith.constant 0 : i32
    %c0_i32_1 = arith.constant 0 : i32
    return %c0_i32, %c0_i32_0 : i32, i32
  }
  func.func @transform_5(%arg0: i32) -> (i32, i32) {
    %c0_i32 = arith.constant 0 : i32
    %c0_i32_0 = arith.constant 0 : i32
    %c0_i32_1 = arith.constant 0 : i32
    return %c0_i32, %c0_i32_0 : i32, i32
  }
  func.func @transform_6(%arg0: i32) -> (i32, i32, i32) {
    %c0_i32 = arith.constant 0 : i32
    %c0_i32_0 = arith.constant 0 : i32
    %c0_i32_1 = arith.constant 0 : i32
    return %arg0, %c0_i32, %c0_i32_0 : i32, i32, i32
  }
}

</mosaic_0001>

<bundles_post_ra>
// kernel: tpu_custom_call.1
= control target key start
LH: loop header
LB: loop body
LE: loop exit
PB: predicated region body
PF: predicated region fallthrough
CT: control target
= control target key end

     0   :  { %11 = vsyncpa [#allocation4], 0  ;;  %s1515_s0 = inlined_call_operand.hbm [shape: f32[2,8,256], index: 0, kind: input, shape index: {}]   ;;  %s1516_s1 = inlined_call_operand.vmem [shape: f32[2,4], index: 1, kind: input, shape index: {}]   ;;  %s1517_s2 = inlined_call_operand.vmem [shape: f32[2,4], index: 2, kind: input, shape index: {}]   ;;  %s1518_s3 = inlined_call_operand.vmem [shape: f32[8,18], index: 3, kind: input, shape index: {}]   ;;  %s1519_s4 = inlined_call_operand.vmem [shape: f32[8,1], index: 4, kind: input, shape index: {}]   ;;  %s1520_s5 = inlined_call_operand.vmem [shape: f32[6,2], index: 5, kind: input, shape index: {}]   ;;  %s1521_s6 = inlined_call_operand.hbm [shape: f32[2,8,256], index: 6, kind: output, shape index: {}]  }
   0x1   :  { %13 = vsyncpa [#allocation4 + $0x1], 0 }
   0x2   :  { %14 = vsyncpa [#allocation5], 0 }
   0x3   :  { %16 = vsyncpa [#allocation5 + $0x1], 0  ;;  %s1240_s21 = smov 0   ;;  %s1242_s22 = smov 0  }
   0x4   :  { %s1244_s23 = smov 0   ;;  %s1246_s24 = smov 0  }
   0x5 LB: > { %s1261_s25 = sadd.s32 4294967295, %s1189_s24   ;;  %s1000_s26 = sadd.s32 4294967294, %s1189_s24   ;;  %s1189_s24 = sphi %s1246_s24, %s1546_s24   ;;  %s1185_s23 = sphi %s1244_s23, %s1545_s23   ;;  %s1181_s22 = sphi %s1242_s22, %s1544_s22   ;;  %s1177_s21 = sphi %s1240_s21, %s1543_s21  }
   0x6   : > { %s1265_s27 = sadd.s32 1, %s1189_s24   ;;  %s29_s28 = sadd.s32 1, %s1185_s23 }
   0x7   : > { %s26_s29 = ssub.s32 %s1189_s24, %s1265_s27  ;;  %p36_p0 = scmp.ne.s32.totalorder %s1185_s23, %s1181_s22 }
   0x8   : > { %p27_p1 = scmp.eq.s32.totalorder %s26_s29, 0  ;;  %p37_p2 = scmp.eq.s32.totalorder %s1189_s24, 0 }
   0x9   : > { %p42_p3 = scmp.ne.s32.totalorder %s1181_s22, %s1177_s21  ;;  %p43_p4 = scmp.eq.s32.totalorder %s1261_s25, 0 }
   0xa   : > { %s1277_s30 = scalar_select %p27_p1, %s1185_s23, %s29_s28  }
   0xb   : > { %p1279_p5 = por %p37_p2, %p36_p0  ;;  %p1283_p6 = por %p43_p4, %p42_p3 }
   0xc   : > { %p171_p7 = scmp.eq.s32.totalorder %s1261_s25, 1  ;;  %p177_p8 = scmp.eq.s32.totalorder %s1000_s26, 1 }
   0xd   : > { %s1525_s8 = scalar_select %p1283_p6, 1, 0 }
   0xe   : > { %p1041_p10 = scmp.lt.s32.totalorder %s1189_s24, 2  ;;  %p1290_p11 = por %p171_p7, %p36_p0 }
   0xf   : > { %p1294_p12 = por %p177_p8, %p42_p3  ;;  %s212_s11 = sand.u32 1, %s1185_s23  }
  0x10   : > { %s1526_s9 = scalar_select %p1290_p11, 1, 0 }
  0x11   : > { %s1527_s10 = scalar_select %p1294_p12, 1, 0 }
  0x12   : > { %s1027_s12 = sshll.u32 %s1189_s24, 8  ;;  %s1003_s13 = sshll.u32 %s212_s11, 4 }
  0x13   : > { %s1303_s16 = scalar_lea.hbm %s1515_s0, %s1027_s12  ;;  %s216_s17 = scalar_lea.vmem [#allocation3], %s1003_s13 }
  0x14   : > { %s224_s18 = sshll.u32 %s216_s17, 4  ;;  %p1307_p13 = pnand %p1041_p10, %p1279_p5  ;;  %s1311_s18 = int_to_ptr.vmem [resolvable:$true] %s224_s18 }
  0x15   : > { %s213_s20 = scalar_lea.sflag [#allocation4], %s212_s11  ;;  %s1097_s26 = scalar_lea.hbm %s1303_s16, 256 }
  0x16   : > { %p1098_p2 = scmp.ne.s32.totalorder %s1303_s16, %s1097_s26  ;;  %p1099_p3 = pneg %p1307_p13 }
  0x17   : > { %s1102_s7 = scalar_lea.hbm %s1515_s0, 512  ;;  %p1103_p5 = scmp.lt.s32.totalorder %s1303_s16, %s1515_s0 }
  0x18   : > { %p1100_p4 = pnand %p1099_p3, %p1098_p2  ;;  %p1104_p8 = scmp.lt.s32.totalorder %s1102_s7, %s1097_s26 }
  0x1a   : > { %p1101_p7 = pneg %p1100_p4  ;;  %p1105_p10 = por %p1104_p8, %p1103_p5 }
  0x1c   : > { %p1106_p9 = pnand %p1105_p10, %p1101_p7 }
  0x1e   : > { %1109 = shalt.err (!%p1106_p9)
}
  0x1f   : > { %s1110_s11 = scalar_lea.vmem %s1311_s18, 256  ;;  %s1191_s14 = smov [#allocation3]  }
  0x20   : > { %p1111_p0 = scmp.ne.s32.totalorder %s1311_s18, %s1110_s11  ;;  %s1115_s15 = sshll.u32 %s1191_s14, 4  ;;  %s1116_s15 = int_to_ptr.vmem [resolvable:$false] %s1115_s15 }
  0x21   : > { %s1117_s17 = scalar_lea.vmem %s1116_s15, 512  ;;  %p1118_p4 = scmp.lt.s32.totalorder %s1311_s18, %s1116_s15 }
  0x22   : > { %p1113_p1 = pnand %p1111_p0, %p1099_p3  ;;  %p1119_p12 = scmp.lt.s32.totalorder %s1117_s17, %s1110_s11 }
  0x24   : > { %p1114_p2 = pneg %p1113_p1  ;;  %p1120_p11 = por %p1119_p12, %p1118_p4 }
  0x26   : > { %p1121_p6 = pnand %p1120_p11, %p1114_p2 }
  0x28   : > { %1124 = shalt.err (!%p1121_p6)
}
  0x29   : > { %1036 = dma.hbm_to_vmem [thread:$0]  (!%p1307_p13), %s1303_s16, 256, %s1311_s18, %s213_s20  }
  0x2a   : > { %p1529_p9 = scmp.lt.s32.totalorder %s1189_s24, 3  ;;  %p1530_p7 = scmp.ge.s32.totalorder %s1189_s24, 1 }
  0x2c   : > { %p230_p0 = pnand %p1530_p7, %p1529_p9 }
  0x2d   : > { %s1338_s26 = sand.u32 (!%p230_p0), 1, %s1181_s22   ;;  %p1531_p6 = scmp.ne.s32.totalorder (!%p230_p0), %s1525_s8, 0 }
  0x2e   : > { %233 = sbr.rel (%p230_p0) target bundleno = 1093 (0x445), region = 44  ;;  %s1007_s28 = sshll.u32 (!%p230_p0), %s1338_s26, 4 }
  0x2f   : > { %s236_s29 = scalar_lea.sflag (!%p230_p0), [#allocation4], %s1338_s26  ;;  %s239_s19 = scalar_lea.vmem (!%p230_p0), [#allocation3], %s1007_s28 }
  0x33   : > { %1168 = dma.done.wait (%p1531_p6), %s236_s29, 256  }
  0x34   : > { %1170 = vsyncadd (%p1531_p6), %s236_s29, 4294967040  ;;  %v1192_v0 = vmov 0.0   ;;  %vm275_vm0 = vcmask 1043456   ;;  %v269_v1 = vld [vmem:[%s239_s19 + $0x8] sm:$0xff]  ;;  %v268_v2 = vld [vmem:[%s239_s19] sm:$0xff]  ;;  %vm271_vm1 = vcmask 31744   ;;  %v446_v9 = vlaneseq }
  0x35   : > { %346 = vmatprep.mubr.f32.mxu0 %v1192_v0  ;;  %427 = vmatprep.mubr.f32.mxu1 %v1192_v0  ;;  %v270_v3 = vld [vmem:[%s1516_s1] sm:$0x3]  ;;  %v354_v4 = vrot.slane %v268_v2, 4  ;;  %v355_v5 = vrot.slane %v269_v1, 4  ;;  %vm434_vm2 = vcmask 1041408   ;;  %vm435_vm3 = vcmask 1043458  }
  0x36   : > { %1009 = vmatprep.subr.msk.mxu0 %vm275_vm0, %v269_v1  ;;  %v353_v6 = vld [vmem:[%s1517_s2] sm:$0x3]  ;;  %vm437_vm4 = vcmask 275460   ;;  %vm436_vm5 = vmor %vm435_vm3, %vm434_vm2  ;;  %v1193_v7 = vmov 1983009808   ;;  %v447_v11 = vshrl.u32 %v446_v9, 7 }
  0x37   : > { %1010 = vmatpush1.msk.msra.mxu0 %vm275_vm0, %v268_v2  ;;  %1012 = vmatprep.subr.msk.mxu1 %vm275_vm0, %v355_v5  ;;  %vm438_vm6 = vmor %vm437_vm4, %vm436_vm5  ;;  %v444_v8 = vunpack.c.l.s4 %v1193_v7  ;;  %v758_v18 = vld [vmem:[%s1520_s5] sm:$0x3f]  ;;  %vm759_vm7 = vcmask 15360   ;;  %s1194_s13 = smov 17   ;;  %vm456_vm8 = vcmask 1041544   ;;  %vm458_vm10 = vcmask 136196  }
  0x38   : > { %1011 = vmatmul.mubr.msk.f32.vlgmr.msra.gmra.mxu0 %vm271_vm1, %v270_v3  ;;  %1013 = vmatpush1.msk.msra.mxu1 %vm275_vm0, %v354_v4  ;;  %439 = vst.msk [vmem:[#allocation2] sm:$0x3f] %vm438_vm6, %v1192_v0  ;;  %vm457_vm9 = vmor %vm435_vm3, %vm456_vm8  ;;  %vm453_vm11 = vcmask 138240   ;;  %v1195_v23 = vmov 0   ;;  %s1196_s11 = smov 96   ;;  %s1197_s14 = smov 110  }
  0x39   : > { %751 = vmatprep.mubr.f32.mxu0 %v1192_v0  ;;  %1014 = vmatmul.mubr.msk.f32.vlgmr.msra.gmra.mxu1 %vm271_vm1, %v353_v6  ;;  %v445_v10 = vunpack.c.0.s8 %v444_v8  ;;  %vm459_vm12 = vmor %vm458_vm10, %vm457_vm9  ;;  %s1198_s15 = smov 94   ;;  %s1199_s17 = smov 126   ;;  %v671_v34 = vld [vmem:[%s1519_s4] sm:$0xff]  ;;  %vm661_vm13 = vcmask 1045504   ;;  %v462_v53 = vand.u32 127, %v446_v9  ;;  %vm582_vm14 = vcmask 769024  }
  0x3a   : > { %833 = vmatprep.mubr.f32.mxu1 %v1192_v0  ;;  %1087 = vset.pattern.permute.xlu1 %v1195_v23  ;;  %s1200_s29 = smov 112   ;;  %s1201_s19 = smov 111   ;;  %vm556_vm15 = vcmask 900096   ;;  %vm569_vm4 = vcmask 785408   ;;  %vm530_vm5 = vcmask 1031168   ;;  %vm627_vm6 = vcmask 908288  }
  0x3b   : > { %v448_v13 = vsub.s32 %v445_v10, %v447_v11  ;;  %1088 = vset.pattern.permute.xlu0 %v1195_v23  ;;  %s1202_s16 = smov 127   ;;  %s1203_s18 = smov 95   ;;  %v463_v56 = vadd.s32 128, %v462_v53  ;;  %v468_v60 = vand.u32 15, %v462_v53  ;;  %vm543_vm8 = vcmask 916480   ;;  %v670_v0 = vld [vmem:[%s1518_s3] sm:$0xff] }
  0x3c   : > { %vm652_vm10 = vcmask 777216   ;;  %p1540_p12 = scmp.ne.s32.totalorder %s1526_s9, 0 }
  0x3d   : > { %v475_v59 = vand.u32 15, %v463_v56  ;;  %vm1395_vm3 = vcmp.lt.s32.totalorder %v468_v60, 15  ;;  %vm1419_vm9 = vcmp.ge.s32.totalorder %v468_v60, 1 }
  0x3f   : > { %vm1391_vm1 = vcmp.lt.s32.totalorder %v475_v59, 15 }
  0xf8   : > { %v348_v12 = vpop.f32.mrf.mxu0 }
  0xf9   : > { %v1361_v15 = vpop.f32.mrf.mxu1 }
  0xfa   : > { %v350_v14 = vpop.f32.mrf.mxu0  ;;  %v851_v35 = vsel %vm434_vm2, %v1361_v15, 0.0 }
  0xfb   : > { %v442_v16 = vcombine.low %v348_v12, %v350_v14  ;;  %v1363_v17 = vpop.f32.mrf.mxu1 }
  0xfc   : > { %1019 = vmatprep.subr.msk.mxu1 %vm434_vm2, %v1363_v17  ;;  %v852_v36 = vsel %vm434_vm2, %v1363_v17, 0.0 }
  0xfd   : > { %v449_v19 = vrot.slane %v442_v16, %v448_v13  ;;  %1020 = vmatpush1.msk.msra.mxu1 %vm434_vm2, %v1361_v15  ;;  %v853_v38 = vadd.f32 %v852_v36, %v851_v35 }
  0xfe   : > { %1021 = vmatmul.mubr.msk.f32.vlgmr.msra.gmra.mxu1 %vm759_vm7, %v758_v18  ;;  %vm1410_vm7 = vcmp.ge.s32.totalorder %v475_v59, 1 }
  0xff   : > { %450 = vrot.lane.b32.xlu0 %v449_v19, %s1194_s13  ;;  %s1028_s13 = sshll.u32 %s1261_s25, 8  ;;  %s916_s25 = scalar_lea.sflag [#allocation5], %s1338_s26 }
 0x171   : > { %v451_v20 = vpop.permute.xlu0 %450 }
 0x172   : > { %v452_v21 = vrot.slane %v451_v20, 6 }
 0x174   : > { %v454_v22 = vsel %vm453_vm11, %v452_v21, %v451_v20  ;;  %vm604_vm11 = vcmask 1039360  }
 0x175   : > { %460 = vst.msk [vmem:[#allocation2] sm:$0x3f] %vm459_vm12, %v454_v22  ;;  %vm677_vm12 = vcmask 146432  }
 0x17c   : > { %v506_v24 = vld [vmem:[#allocation2] sm:$0x3f] }
 0x17d   : > { %v515_v25 = vrot.slane %v506_v24, %v448_v13  ;;  %v508_v26 = vcombine.high %v506_v24, %v506_v24  ;;  %v589_v29 = vcombine.low %v506_v24, %v506_v24  ;;  %v1015_v8 = vld.sshfl [vmem:[#allocation2] sm:$0x33 pattern:$0x76325410] }
 0x17e   : > { %v501_v16 = vcombine.high %v1015_v8, %v1015_v8 }
 0x17f   : > { %563 = vrot.lane.b32.xlu0 %v515_v25, %s1196_s11  ;;  %550 = vrot.lane.b32.xlu1 %v515_v25, %s1197_s14  ;;  %v522_v27 = vrot.slane %v508_v26, %v448_v13  ;;  %v523_v28 = vcombine.high %v515_v25, %v515_v25  ;;  %v596_v30 = vrot.slane %v589_v29, %v448_v13 }
 0x180   : > { %v645_v31 = vcombine.low %v515_v25, %v515_v25 }
 0x181   : > { %v597_v32 = vcombine.high %v596_v30, %v596_v30  ;;  %v644_v33 = vcombine.low %v596_v30, %v596_v30 }
 0x183   : > { %576 = vrot.lane.b32.xlu0 %v515_v25, %s1198_s15  ;;  %524 = vrot.lane.b32.xlu1 %v515_v25, %s1199_s17 }
 0x187   : > { %537 = vrot.lane.b32.xlu0 %v515_v25, %s1200_s29  ;;  %621 = vrot.lane.b32.xlu1 %v515_v25, %s1201_s19 }
 0x18b   : > { %602 = vrot.lane.b32.xlu0 %v515_v25, %s1202_s16  ;;  %554 = vrot.lane.b32.xlu1 %v522_v27, %s1197_s14 }
 0x18f   : > { %552 = vrot.lane.b32.xlu0 %v523_v28, %s1197_s14  ;;  %567 = vrot.lane.b32.xlu1 %v522_v27, %s1196_s11 }
 0x193   : > { %565 = vrot.lane.b32.xlu0 %v523_v28, %s1196_s11  ;;  %526 = vrot.lane.b32.xlu1 %v523_v28, %s1199_s17  ;;  %s267_s11 = scalar_lea.vmem [#allocation6], %s1007_s28  ;;  %s1204_s28 = smov [#allocation6]  }
 0x194   : > { %s930_s14 = sshll.u32 %s267_s11, 4  ;;  %s931_s14 = int_to_ptr.vmem [resolvable:$true] %s930_s14 }
 0x197   : > { %528 = vrot.lane.b32.xlu0 %v522_v27, %s1199_s17  ;;  %578 = vrot.lane.b32.xlu1 %v523_v28, %s1198_s15 }
 0x19b   : > { %580 = vrot.lane.b32.xlu0 %v522_v27, %s1198_s15  ;;  %623 = vrot.lane.b32.xlu1 %v523_v28, %s1201_s19 }
 0x19f   : > { %625 = vrot.lane.b32.xlu0 %v522_v27, %s1201_s19  ;;  %541 = vrot.lane.b32.xlu1 %v522_v27, %s1200_s29  ;;  %s1125_s19 = scalar_lea.vmem %s931_s14, 256 }
 0x1a0   : > { %p1126_p11 = scmp.ne.s32.totalorder %s931_s14, %s1125_s19 }
 0x1a2   : > { %p1127_p13 = pnand %p1126_p11, %p1540_p12 }
 0x1a3   : > { %539 = vrot.lane.b32.xlu0 %v523_v28, %s1200_s29  ;;  %648 = vrot.lane.b32.xlu1 %v596_v30, %s1203_s18  ;;  %s1478_s29 = scalar_lea.hbm %s1521_s6, %s1028_s13 }
 0x1a4   : > { %p1128_p1 = pneg %p1127_p13 }
 0x1a7   : > { %650 = vrot.lane.b32.xlu0 %v645_v31, %s1203_s18  ;;  %600 = vrot.lane.b32.xlu1 %v597_v32, %s1202_s16  ;;  %v505_v31 = vsel %vm1410_vm7, %v501_v16, 0.0 }
 0x1ab   : > { %646 = vrot.lane.b32.xlu0 %v644_v33, %s1203_s18  ;;  %598 = vrot.lane.b32.xlu1 %v596_v30, %s1202_s16  ;;  %s1129_s16 = sshll.u32 %s1204_s28, 4  ;;  %s1130_s16 = int_to_ptr.vmem [resolvable:$false] %s1129_s16 }
 0x1ac   : > { %s1131_s18 = scalar_lea.vmem %s1130_s16, 512  ;;  %p1132_p3 = scmp.lt.s32.totalorder %s931_s14, %s1130_s16 }
 0x1ad   : > { %p1133_p5 = scmp.lt.s32.totalorder %s1131_s18, %s1125_s19 }
 0x1af   : > { %674 = vperm.xlu1 %1087, %v671_v34   ;;  %p1134_p8 = por %p1133_p5, %p1132_p3 }
 0x1b1   : > { %p1135_p10 = pnand %p1134_p8, %p1128_p1 }
 0x1be   : > { %v1380_v37 = vpop.f32.mrf.mxu1 }
 0x1bf   : > { %v845_v40 = vsel %vm661_vm13, %v1380_v37, 0.0 }
 0x1c0   : > { %v1382_v39 = vpop.f32.mrf.mxu1 }
 0x1c1   : > { %v846_v41 = vsel %vm661_vm13, %v1382_v39, 0.0 }
 0x1c2   : > { %v847_v42 = vadd.f32 %v846_v41, %v845_v40 }
 0x1ca   : > { %854 = vadd.xlane.f32.xlu0 %v853_v38 }
 0x1d3   : > { %848 = vadd.xlane.f32.xlu1 %v847_v42 }
 0x1f1   : > { %v564_v43 = vpop.permute.xlu0 %563  ;;  %v551_v44 = vpop.permute.xlu1 %550 }
 0x1f5   : > { %v577_v45 = vpop.permute.xlu0 %576  ;;  %v525_v46 = vpop.permute.xlu1 %524 }
 0x1f9   : > { %v538_v47 = vpop.permute.xlu0 %537  ;;  %v622_v48 = vpop.permute.xlu1 %621 }
 0x1fd   : > { %v1388_v49 = vpop.permute.xlu0 %602  ;;  %v555_v50 = vpop.permute.xlu1 %554 }
 0x201   : > { %v553_v51 = vpop.permute.xlu0 %552  ;;  %v568_v52 = vpop.permute.xlu1 %567 }
 0x202   : > { %v558_v3 = vsel %vm556_vm15, %v553_v51, %v555_v50  ;;  %v557_v11 = vsel %vm556_vm15, %v551_v44, %v553_v51 }
 0x203   : > { %v562_v9 = vsel %vm1391_vm1, %v558_v3, 0.0  ;;  %v561_v22 = vsel %vm1395_vm3, %v557_v11, 0.0 }
 0x204   : > { %v635_v18 = vrot.slane %v562_v9, 6  ;;  %v634_v32 = vrot.slane %v561_v22, 6 }
 0x205   : > { %v566_v54 = vpop.permute.xlu0 %565  ;;  %v527_v55 = vpop.permute.xlu1 %526 }
 0x206   : > { %v571_v10 = vsel %vm569_vm4, %v566_v54, %v568_v52  ;;  %v570_v24 = vsel %vm569_vm4, %v564_v43, %v566_v54  ;;  %v531_v25 = vsel %vm530_vm5, %v525_v46, %v527_v55 }
 0x207   : > { %v575_v19 = vsel %vm1410_vm7, %v571_v10, 0.0  ;;  %v574_v33 = vsel %vm1419_vm9, %v570_v24, 0.0  ;;  %v535_v34 = vsel %vm1395_vm3, %v531_v25, 0.0 }
 0x208   : > { %v641_v28 = vrot.slane %v575_v19, 4  ;;  %v611_v51 = vrot.slane %v535_v34, 4 }
 0x209   : > { %v529_v57 = vpop.permute.xlu0 %528  ;;  %v579_v58 = vpop.permute.xlu1 %578 }
 0x20a   : > { %v583_v61 = vsel %vm582_vm14, %v577_v45, %v579_v58  ;;  %v532_v13 = vsel %vm530_vm5, %v527_v55, %v529_v57 }
 0x20b   : > { %v587_v5 = vsel %vm1395_vm3, %v583_v61, 0.0  ;;  %v536_v26 = vsel %vm1391_vm1, %v532_v13, 0.0 }
 0x20c   : > { %v612_v40 = vrot.slane %v536_v26, 4 }
 0x20d   : > { %v581_v62 = vpop.permute.xlu0 %580  ;;  %v624_v63 = vpop.permute.xlu1 %623 }
 0x20e   : > { %v584_v1 = vsel %vm582_vm14, %v579_v58, %v581_v62  ;;  %v628_v29 = vsel %vm627_vm6, %v622_v48, %v624_v63 }
 0x20f   : > { %v588_v4 = vsel %vm1391_vm1, %v584_v1, 0.0  ;;  %v664_v44 = vsel %vm434_vm2, %v628_v29, %v634_v32 }
 0x210   : > { %1016 = vmatprep.subr.msk.mxu0 %vm434_vm2, %v588_v4 }
 0x211   : > { %v626_v6 = vpop.permute.xlu0 %625  ;;  %1017 = vmatpush1.msk.msra.mxu0 %vm434_vm2, %v587_v5  ;;  %v542_v7 = vpop.permute.xlu1 %541 }
 0x212   : > { %v629_v14 = vsel %vm627_vm6, %v624_v63, %v626_v6 }
 0x213   : > { %v665_v27 = vsel %vm434_vm2, %v629_v14, %v635_v18 }
 0x214   : > { %v667_v43 = vsel %vm275_vm0, %v665_v27, %v641_v28 }
 0x215   : > { %v540_v20 = vpop.permute.xlu0 %539  ;;  %v649_v21 = vpop.permute.xlu1 %648 }
 0x216   : > { %v545_v30 = vsel %vm543_vm8, %v540_v20, %v542_v7  ;;  %v544_v35 = vsel %vm543_vm8, %v538_v47, %v540_v20  ;;  %v640_v47 = vrot.slane %v574_v33, 4 }
 0x217   : > { %v549_v45 = vsel %vm1410_vm7, %v545_v30, 0.0  ;;  %v548_v50 = vsel %vm1419_vm9, %v544_v35, 0.0 }
 0x218   : > { %v618_v55 = vrot.slane %v549_v45, 2  ;;  %v666_v58 = vsel %vm275_vm0, %v664_v44, %v640_v47  ;;  %v617_v59 = vrot.slane %v548_v50, 2  ;;  %v897_v47 = vrot.slane %v1363_v17, 2 }
 0x219   : > { %v651_v36 = vpop.permute.xlu0 %650  ;;  %v601_v38 = vpop.permute.xlu1 %600 }
 0x21a   : > { %v654_v41 = vsel %vm652_vm10, %v649_v21, %v651_v36  ;;  %v606_v42 = vsel %vm604_vm11, %v601_v38, %v1388_v49  ;;  %v504_v49 = vsel %vm1419_vm9, %v1015_v8, 0.0 }
 0x21b   : > { %v658_v46 = vsel %vm434_vm2, %v505_v31, %v606_v42  ;;  %v669_v48 = vsel %vm661_vm13, %v667_v43, %v654_v41 }
 0x21c   : > { %715 = vmatprep.subr.mxu0 %v669_v48  ;;  %v660_v54 = vsel %vm275_vm0, %v658_v46, %v612_v40  ;;  %v896_v48 = vrot.slane %v1361_v15, 2 }
 0x21d   : > { %v647_v52 = vpop.permute.xlu0 %646  ;;  %v599_v53 = vpop.permute.xlu1 %598  ;;  %v663_v62 = vsel %vm661_vm13, %v660_v54, %v618_v55 }
 0x21e   : > { %v653_v56 = vsel %vm652_vm10, %v647_v52, %v649_v21  ;;  %v605_v57 = vsel %vm604_vm11, %v599_v53, %v601_v38 }
 0x21f   : > { %v657_v60 = vsel %vm434_vm2, %v504_v49, %v605_v57  ;;  %v668_v61 = vsel %vm661_vm13, %v666_v58, %v653_v56 }
 0x220   : > { %716 = vmatpush1.msra.mxu0 %v668_v61  ;;  %v659_v63 = vsel %vm275_vm0, %v657_v60, %v611_v51  ;;  %vm861_vm0 = vcmask 7168  }
 0x221   : > { %717 = vmatprep.subr.mxu0 %v663_v62  ;;  %v662_v1 = vsel %vm661_vm13, %v659_v63, %v617_v59 }
 0x222   : > { %718 = vmatpush1.msra.mxu0 %v662_v1 }
 0x223   : > { %1018 = vmatmul.mubr.msk.f32.vlgmr.msra.gmra.mxu0 %vm677_vm12, %v670_v0 }
 0x22a   : > { %v675_v3 = vpop.permute.xlu1 %674 }
 0x253   : > { %v855_v8 = vpop.xlane.xlu0 %854 }
 0x254   : > { %v856_v9 = vmul.f32 0.00390625, %v855_v8 }
 0x256   : > { %v858_v11 = vrot.slane %v856_v9, 2 }
 0x25c   : > { %v849_v10 = vpop.xlane.xlu1 %848 }
 0x25d   : > { %v850_v12 = vmul.f32 0.00390625, %v849_v10 }
 0x25f   : > { %v860_v13 = vsel %vm661_vm13, %v850_v12, %v858_v11 }
 0x260   : > { %v863_v18 = vsel %vm861_vm0, %v860_v13, -inf }
 0x2e3   : > { %v753_v2 = vpop.f32.mrf.mxu0 }
 0x2e4   : > { %v754_v5 = vadd.f32 %v753_v2, %v675_v3 }
 0x2e5   : > { %v755_v4 = vpop.f32.mrf.mxu0 }
 0x2e6   : > { %v756_v6 = vadd.f32 %v755_v4, %v675_v3 }
 0x2e8   : > { %v840_v7 = vadd.f32 %v756_v6, %v754_v5 }
 0x2ea   : > { %841 = vadd.xlane.f32.xlu0 %v840_v7 }
 0x373   : > { %v842_v14 = vpop.xlane.xlu0 %841 }
 0x374   : > { %v844_v16 = vmul.f32 0.00390625, %v842_v14 }
 0x376   : > { %v862_v19 = vsel %vm861_vm0, %v844_v16, -inf }
 0x377   : > { %v864_v20 = vmax.f32 %v862_v19, %v863_v18 }
 0x379   : > { %v865_v21 = vrot.slane %v864_v20, 4 }
 0x37b   : > { %v866_v22 = vmax.f32 %v864_v20, %v865_v21 }
 0x37d   : > { %v867_v23 = vrot.slane %v866_v22, 2 }
 0x37f   : > { %v868_v24 = vmax.f32 %v866_v22, %v867_v23 }
 0x381   : > { %v869_v25 = vrot.slane %v868_v24, 1 }
 0x383   : > { %v870_v26 = vmax.f32 %v868_v24, %v869_v25 }
 0x385   : > { %v871_v27 = vsub.f32 %v844_v16, %v870_v26  ;;  %v872_v28 = vsub.f32 %v860_v13, %v870_v26 }
 0x387   : > { %v873_v29 = vmul.f32 1.442695, %v871_v27  ;;  %v875_v30 = vmul.f32 1.442695, %v872_v28 }
 0x389   : > { %1091 = vpow2.f32 %v873_v29 }
 0x38a   : > { %1093 = vpow2.f32 %v875_v30 }
 0x396   : > { %v1092_v31 = vpop.eup %1091 }
 0x397   : > { %v1094_v32 = vpop.eup %1093  ;;  %v877_v33 = vsel %vm861_vm0, %v1092_v31, 0.0 }
 0x398   : > { %v878_v34 = vsel %vm861_vm0, %v1094_v32, 0.0 }
 0x399   : > { %v879_v35 = vadd.f32 %v878_v34, %v877_v33 }
 0x39b   : > { %v880_v36 = vrot.slane %v879_v35, 4 }
 0x39d   : > { %v881_v38 = vadd.f32 %v880_v36, %v879_v35 }
 0x39f   : > { %v882_v40 = vrot.slane %v881_v38, 2 }
 0x3a1   : > { %v883_v41 = vadd.f32 %v882_v40, %v881_v38 }
 0x3a3   : > { %v884_v42 = vrot.slane %v883_v41, 1 }
 0x3a5   : > { %v885_v43 = vadd.f32 %v884_v42, %v883_v41 }
 0x3a7   : > { %1095 = vrcp.f32 %v885_v43 }
 0x3b4   : > { %v1096_v44 = vpop.eup %1095 }
 0x3b5   : > { %v888_v45 = vmul.f32 %v1096_v44, %v1094_v32  ;;  %v887_v46 = vmul.f32 %v1096_v44, %v1092_v31 }
 0x3b7   : > { %891 = vperm.xlu0 %1088, %v888_v45   ;;  %906 = vperm.xlu1 %1087, %v887_v46  }
 0x432   : > { %v892_v50 = vpop.permute.xlu0 %891  ;;  %v907_v51 = vpop.permute.xlu1 %906 }
 0x433   : > { %v894_v52 = vmul.f32 %v892_v50, %v1380_v37  ;;  %v895_v53 = vmul.f32 %v892_v50, %v1382_v39  ;;  %v900_v49 = vmul.f32 %v896_v48, %v892_v50  ;;  %v901_v54 = vmul.f32 %v897_v47, %v892_v50 }
 0x434   : > { %v909_v55 = vmul.f32 %v907_v51, %v754_v5  ;;  %v910_v56 = vmul.f32 %v907_v51, %v756_v6 }
 0x435   : > { %v902_v15 = vsel %vm661_vm13, %v894_v52, %v900_v49  ;;  %v903_v17 = vsel %vm661_vm13, %v895_v53, %v901_v54 }
 0x436   : > { %v911_v57 = vadd.f32 %v909_v55, %v902_v15  ;;  %v912_v58 = vadd.f32 %v910_v56, %v903_v17 }
 0x438   : > { %913 = vst [vmem:[%s267_s11] sm:$0xff] %v911_v57  ;;  %914 = vst [vmem:[%s267_s11 + $0x8] sm:$0xff] %v912_v58 }
 0x439   : > { %1138 = shalt.err (!%p1135_p10)
}
 0x43a   : > { %s1139_s20 = scalar_lea.hbm %s1478_s29, 256  ;;  %s1143_s7 = scalar_lea.hbm %s1521_s6, 512 }
 0x43b   : > { %p1140_p2 = scmp.ne.s32.totalorder %s1478_s29, %s1139_s20  ;;  %p1144_p7 = scmp.lt.s32.totalorder %s1478_s29, %s1521_s6 }
 0x43c   : > { %p1145_p0 = scmp.lt.s32.totalorder %s1143_s7, %s1139_s20 }
 0x43d   : > { %p1141_p4 = pnand %p1140_p2, %p1540_p12 }
 0x43e   : > { %p1146_p6 = por %p1145_p0, %p1144_p7 }
 0x43f   : > { %p1142_p9 = pneg %p1141_p4 }
 0x441   : > { %p1147_p11 = pnand %p1146_p6, %p1142_p9 }
 0x443   : > { %1150 = shalt.err (!%p1147_p11)
}
 0x444   : > { %1031 = dma.vmem_to_hbm [thread:$0]  (%p1540_p12), %s931_s14, 256, %s1478_s29, %s916_s25  }
 0x445 PF: > { %s942_s11 = sand.u32 1, %s1177_s21   ;;  %p1541_p13 = scmp.ne.s32.totalorder %s1527_s10, 0 }
 0x446   : > { %p1542_p1 = scmp.ge.s32.totalorder %s1189_s24, 2  ;;  %s943_s15 = scalar_lea.sflag [#allocation5], %s942_s11 }
 0x448   : > { %p1038_p3 = pnand %p1542_p1, %p1541_p13 }
 0x44a   : > { %p1039_p5 = pneg %p1038_p3 }
 0x44c   : > { %1172 = dma.done.wait (%p1039_p5), %s943_s15, 256  }
 0x44d   : > { %1174 = vsyncadd (%p1039_p5), %s943_s15, 4294967040  ;;  %p19_p8 = scmp.ge.s32.totalorder %s1265_s27, 4   ;;  %s1543_s21 = smov %s1181_s22 }
 0x44e   : > { %s1544_s22 = smov %s1185_s23  ;;  %s1545_s23 = smov %s1277_s30 }
 0x44f   : > { %s1546_s24 = smov %s1265_s27  ;;  %21 = sbr.rel (!%p19_p8) target bundleno = 5 (0x5), region = 89 }
 0x454   :  { %948 = vsyncpa [#allocation4], 1 }
 0x455   :  { %950 = vsyncpa [#allocation4 + $0x1], 1 }
 0x456   :  { %951 = vsyncpa [#allocation5], 1 }
 0x457   :  { %953 = vsyncpa [#allocation5 + $0x1], 1 }

</bundles_post_ra>
